<compile_context>
chip_gen: v7x
topology: tpu7x:2x2x1
jax: 0.10.0
libtpu: 0.0.40
codegen_flags: <defaults>
</compile_context>

<pallas_src>
import functools

import jax
import jax.numpy as jnp
from jax.experimental import pallas as pl
from jax.experimental.pallas import tpu as pltpu

_LANE = 128
_ROW_ALIGN = 32          # int8 mask output -> (32, 128) min sublane tile
_MAX_BLOCK_ROWS = 2048   # ~8.5 MiB of double-buffered VMEM at the max tile


def _mix32(node_ids, seed):
    """Counter-based per-node hash (murmur3 finalizer), all in int32.

    Arithmetic shifts + masks reproduce the logical-shift uint32 mix
    bit-exactly, so the result is a deterministic, uniformly distributed
    32-bit pattern per (seed, node_id) — identical for every edge touching
    the same node.  Pure VPU integer ops; lowers under Mosaic and on the
    CPU interpret fallback.
    """
    h = node_ids ^ seed
    h = h ^ ((h >> 16) & 0xFFFF)
    h = h * (-2048144789)            # 0x85EBCA6B as int32 (wrapping mul)
    h = h ^ ((h >> 13) & 0x7FFFF)
    h = h * (-1028477379)            # 0xC2B2AE35 as int32 (wrapping mul)
    h = h ^ ((h >> 16) & 0xFFFF)
    return h                         # full mixed value, interpreted signed


def _drop_node_kernel(seed_ref, ei_ref, ew_ref, keep_ref, ew_out_ref,
                      *, threshold: int):
    """One (block_rows, 128) tile of edges: int8 keep mask + masked weights."""
    seed = seed_ref[0]
    thr = jnp.int32(threshold)               # keep iff signed hash >= thr
    keep_src = _mix32(ei_ref[0], seed) >= thr
    keep_dst = _mix32(ei_ref[1], seed) >= thr
    edge_keep = jnp.logical_and(keep_src, keep_dst)
    keep_ref[...] = edge_keep.astype(jnp.int8)
    ew = ew_ref[...]
    ew_out_ref[...] = jnp.where(edge_keep, ew, jnp.zeros_like(ew))


def _round_up(x, m):
    return ((x + m - 1) // m) * m


def drop_node(edge_index, edge_weight=None, p: float = 0.5,
              training: bool = True, seed: int = 0):
    """Static-shape DropNode.

    Returns (edge_index, edge_weight_masked, keep_mask).  The filtered edge
    set of the PyTorch reference is {edges where keep_mask is True}.
    Pass a fresh `seed` every step to redraw the node Bernoullis.
    """
    if p < 0.0 or p > 1.0:
        raise ValueError(
            f"Dropout probability has to be between 0 and 1, got {p}")

    num_edges = int(edge_index.shape[1])
    if edge_weight is None:
        edge_weight = jnp.ones((num_edges,), jnp.float32)

    if not training or p == 0.0:
        return edge_index, edge_weight, jnp.ones((num_edges,), jnp.bool_)
    if p >= 1.0:
        return (edge_index, jnp.zeros_like(edge_weight),
                jnp.zeros((num_edges,), jnp.bool_))

    # Lane/sublane-dense edge layout: pad E and reshape to (rows, 128);
    # rows a multiple of 32 (int8 output tile).  grid = cdiv(rows, block)
    # so the last tile may be partial — no whole extra tiles are padded.
    rows = _round_up(pl.cdiv(num_edges, _LANE), _ROW_ALIGN)
    block_rows = min(_MAX_BLOCK_ROWS, rows)
    grid = pl.cdiv(rows, block_rows)
    e_pad = rows * _LANE
    pad = e_pad - num_edges

    # One padded int32 slab for both endpoint rows, weights in native dtype.
    ei = jnp.pad(edge_index.astype(jnp.int32),
                 ((0, 0), (0, pad))).reshape(2, rows, _LANE)
    ew = jnp.pad(edge_weight, (0, pad)).reshape(rows, _LANE)
    seed_arr = jnp.asarray([seed], dtype=jnp.int32)

    # keep iff signed_hash >= round(p * 2^32) - 2^31  (P(keep) = 1 - p).
    threshold = min(int(round(float(p) * (1 << 32))) - (1 << 31),
                    (1 << 31) - 1)
    kernel = functools.partial(_drop_node_kernel, threshold=threshold)

    ew_itemsize = jnp.dtype(ew.dtype).itemsize
    cost = pl.CostEstimate(
        flops=30 * e_pad,                                   # ~2 hashes/edge
        transcendentals=0,
        bytes_accessed=(8 + 1 + 2 * ew_itemsize) * e_pad)   # ids + mask + 2*ew

    ei_spec = pl.BlockSpec((2, block_rows, _LANE), lambda i: (0, i, 0))
    edge_spec = pl.BlockSpec((block_rows, _LANE), lambda i: (i, 0))

    keep2d, ew2d = pl.pallas_call(
        kernel,
        out_shape=(jax.ShapeDtypeStruct((rows, _LANE), jnp.int8),
                   jax.ShapeDtypeStruct((rows, _LANE), ew.dtype)),
        grid=(grid,),
        in_specs=[pl.BlockSpec(memory_space=pltpu.MemorySpace.SMEM),  # seed
                  ei_spec, edge_spec],
        out_specs=(edge_spec, edge_spec),
        compiler_params=pltpu.CompilerParams(
            dimension_semantics=("parallel",)),
        cost_estimate=cost,
    )(seed_arr, ei, ew)

    keep_mask = keep2d.reshape(e_pad)[:num_edges].astype(jnp.bool_)
    ew_out = ew2d.reshape(e_pad)[:num_edges]
    # TODO(synk): dynamic compaction of surviving edges (data-dependent output
    # size) has no static-shape Pallas equivalent; mask representation returned.
    return edge_index, ew_out, keep_mask


class DropNode:
    """JAX/Pallas port of mooon.layers.DropNode (mask-based output)."""

    def __init__(self, p: float = 0.5):
        self.p = p
        self.training = True

    def __call__(self, edge_index, edge_weight=None, seed: int = 0):
        # NOTE: pass a fresh seed each call to redraw the node dropout.
        return drop_node(edge_index, edge_weight, self.p,
                         training=self.training, seed=seed)


if __name__ == "__main__":
    key = jax.random.PRNGKey(0)
    k1, k2 = jax.random.split(key)

    NUM_NODES = 64
    NUM_EDGES = 128
    P = 0.5
    SEED = 42

    edge_index = jax.random.randint(k1, (2, NUM_EDGES), 0, NUM_NODES,
                                    dtype=jnp.int32)
    edge_weight = jax.random.uniform(k2, (NUM_EDGES,), dtype=jnp.float32)

    layer = DropNode(p=P)
    ei_out, ew_out, keep_mask = layer(edge_index, edge_weight, seed=SEED)
    jax.block_until_ready((ei_out, ew_out, keep_mask))

    # Pure-JAX reference of the same counter-based per-node RNG.
    thr = jnp.int32(min(int(round(P * (1 << 32))) - (1 << 31), (1 << 31) - 1))
    seed_s = jnp.int32(SEED)
    ref_keep = jnp.logical_and(_mix32(edge_index[0], seed_s) >= thr,
                               _mix32(edge_index[1], seed_s) >= thr)

    masks_match = bool(jnp.array_equal(keep_mask, ref_keep))
    weights_ok = bool(jnp.all(jnp.where(keep_mask, ew_out == edge_weight,
                                        ew_out == 0.0)))
    drop_frac = float(1.0 - jnp.mean(keep_mask.astype(jnp.float32)))
    shapes_ok = (ei_out.shape == edge_index.shape
                 and ew_out.shape == edge_weight.shape
                 and ew_out.dtype == edge_weight.dtype
                 and keep_mask.shape == (NUM_EDGES,)
                 and keep_mask.dtype == jnp.bool_)
    # ~p^2 + 2p(1-p) of edges dropped for p=0.5 -> expect roughly 0.75.
    frac_ok = 0.4 < drop_frac < 0.95
    assert masks_match and weights_ok and shapes_ok and frac_ok

    print("KERNEL_OK")
</pallas_src>

<mosaic_0001>
module attributes {stable_mosaic.version = 11 : i64} {
  func.func @_drop_node_kernel(%arg0: i32, %arg1: memref<1xi32, #tpu.memory_space<smem>>, %arg2: memref<2x32x128xi32, #tpu.memory_space<vmem>>, %arg3: memref<32x128xf32, #tpu.memory_space<vmem>>, %arg4: memref<32x128xi8, #tpu.memory_space<vmem>>, %arg5: memref<32x128xf32, #tpu.memory_space<vmem>>) attributes {dimension_semantics = [#tpu.dimension_semantics<parallel>], iteration_bounds = array<i64: 1>, scalar_prefetch = 0 : i64, scratch_operands = 0 : i64, tpu.core_type = #tpu.core_type<tc>, window_params = [{transform_indices = @transform_0, window_bounds = array<i64: 1>}, {transform_indices = @transform_1, window_bounds = array<i64: 2, 32, 128>}, {transform_indices = @transform_2, window_bounds = array<i64: 32, 128>}, {transform_indices = @transform_3, window_bounds = array<i64: 32, 128>}, {transform_indices = @transform_4, window_bounds = array<i64: 32, 128>}]} {
    %c0 = arith.constant 0 : index
    %0 = memref.load %arg1[%c0] : memref<1xi32, #tpu.memory_space<smem>>
    %c0_0 = arith.constant 0 : index
    %c0_1 = arith.constant 0 : index
    %c0_2 = arith.constant 0 : index
    %1 = vector.load %arg2[%c0_0, %c0_1, %c0_2] : memref<2x32x128xi32, #tpu.memory_space<vmem>>, vector<1x32x128xi32>
    %2 = vector.shape_cast %1 : vector<1x32x128xi32> to vector<32x128xi32>
    %3 = vector.broadcast %0 : i32 to vector<32x128xi32>
    %4 = arith.xori %2, %3 : vector<32x128xi32>
    %c16_i32 = arith.constant 16 : i32
    %5 = vector.broadcast %c16_i32 : i32 to vector<32x128xi32>
    %6 = arith.shrsi %4, %5 : vector<32x128xi32>
    %c65535_i32 = arith.constant 65535 : i32
    %7 = vector.broadcast %c65535_i32 : i32 to vector<32x128xi32>
    %8 = arith.andi %6, %7 : vector<32x128xi32>
    %9 = arith.xori %4, %8 : vector<32x128xi32>
    %c-2048144789_i32 = arith.constant -2048144789 : i32
    %10 = vector.broadcast %c-2048144789_i32 : i32 to vector<32x128xi32>
    %11 = arith.muli %9, %10 : vector<32x128xi32>
    %c13_i32 = arith.constant 13 : i32
    %12 = vector.broadcast %c13_i32 : i32 to vector<32x128xi32>
    %13 = arith.shrsi %11, %12 : vector<32x128xi32>
    %c524287_i32 = arith.constant 524287 : i32
    %14 = vector.broadcast %c524287_i32 : i32 to vector<32x128xi32>
    %15 = arith.andi %13, %14 : vector<32x128xi32>
    %16 = arith.xori %11, %15 : vector<32x128xi32>
    %c-1028477379_i32 = arith.constant -1028477379 : i32
    %17 = vector.broadcast %c-1028477379_i32 : i32 to vector<32x128xi32>
    %18 = arith.muli %16, %17 : vector<32x128xi32>
    %c16_i32_3 = arith.constant 16 : i32
    %19 = vector.broadcast %c16_i32_3 : i32 to vector<32x128xi32>
    %20 = arith.shrsi %18, %19 : vector<32x128xi32>
    %c65535_i32_4 = arith.constant 65535 : i32
    %21 = vector.broadcast %c65535_i32_4 : i32 to vector<32x128xi32>
    %22 = arith.andi %20, %21 : vector<32x128xi32>
    %23 = arith.xori %18, %22 : vector<32x128xi32>
    %c0_i32 = arith.constant 0 : i32
    %24 = vector.broadcast %c0_i32 : i32 to vector<32x128xi32>
    %25 = arith.cmpi sge, %23, %24 : vector<32x128xi32>
    %c1 = arith.constant 1 : index
    %c0_5 = arith.constant 0 : index
    %c0_6 = arith.constant 0 : index
    %26 = vector.load %arg2[%c1, %c0_5, %c0_6] : memref<2x32x128xi32, #tpu.memory_space<vmem>>, vector<1x32x128xi32>
    %27 = vector.shape_cast %26 : vector<1x32x128xi32> to vector<32x128xi32>
    %28 = vector.broadcast %0 : i32 to vector<32x128xi32>
    %29 = arith.xori %27, %28 : vector<32x128xi32>
    %c16_i32_7 = arith.constant 16 : i32
    %30 = vector.broadcast %c16_i32_7 : i32 to vector<32x128xi32>
    %31 = arith.shrsi %29, %30 : vector<32x128xi32>
    %c65535_i32_8 = arith.constant 65535 : i32
    %32 = vector.broadcast %c65535_i32_8 : i32 to vector<32x128xi32>
    %33 = arith.andi %31, %32 : vector<32x128xi32>
    %34 = arith.xori %29, %33 : vector<32x128xi32>
    %c-2048144789_i32_9 = arith.constant -2048144789 : i32
    %35 = vector.broadcast %c-2048144789_i32_9 : i32 to vector<32x128xi32>
    %36 = arith.muli %34, %35 : vector<32x128xi32>
    %c13_i32_10 = arith.constant 13 : i32
    %37 = vector.broadcast %c13_i32_10 : i32 to vector<32x128xi32>
    %38 = arith.shrsi %36, %37 : vector<32x128xi32>
    %c524287_i32_11 = arith.constant 524287 : i32
    %39 = vector.broadcast %c524287_i32_11 : i32 to vector<32x128xi32>
    %40 = arith.andi %38, %39 : vector<32x128xi32>
    %41 = arith.xori %36, %40 : vector<32x128xi32>
    %c-1028477379_i32_12 = arith.constant -1028477379 : i32
    %42 = vector.broadcast %c-1028477379_i32_12 : i32 to vector<32x128xi32>
    %43 = arith.muli %41, %42 : vector<32x128xi32>
    %c16_i32_13 = arith.constant 16 : i32
    %44 = vector.broadcast %c16_i32_13 : i32 to vector<32x128xi32>
    %45 = arith.shrsi %43, %44 : vector<32x128xi32>
    %c65535_i32_14 = arith.constant 65535 : i32
    %46 = vector.broadcast %c65535_i32_14 : i32 to vector<32x128xi32>
    %47 = arith.andi %45, %46 : vector<32x128xi32>
    %48 = arith.xori %43, %47 : vector<32x128xi32>
    %c0_i32_15 = arith.constant 0 : i32
    %49 = vector.broadcast %c0_i32_15 : i32 to vector<32x128xi32>
    %50 = arith.cmpi sge, %48, %49 : vector<32x128xi32>
    %51 = arith.andi %25, %50 : vector<32x128xi1>
    %52 = arith.extui %51 : vector<32x128xi1> to vector<32x128xi8>
    %c0_16 = arith.constant 0 : index
    %c0_17 = arith.constant 0 : index
    %53 = vector.load %arg4[%c0_16, %c0_17] : memref<32x128xi8, #tpu.memory_space<vmem>>, vector<32x128xi8>
    tpu.vector_store %arg4[%c0_16, %c0_17], %52 {strides = array<i32>} : memref<32x128xi8, #tpu.memory_space<vmem>>, vector<32x128xi8>,
    %c0_18 = arith.constant 0 : index
    %c0_19 = arith.constant 0 : index
    %54 = vector.load %arg3[%c0_18, %c0_19] : memref<32x128xf32, #tpu.memory_space<vmem>>, vector<32x128xf32>
    %cst = arith.constant 0.000000e+00 : f32
    %55 = vector.broadcast %cst : f32 to vector<32x128xf32>
    %56 = arith.select %51, %54, %55 : vector<32x128xi1>, vector<32x128xf32>
    %c0_20 = arith.constant 0 : index
    %c0_21 = arith.constant 0 : index
    %57 = vector.load %arg5[%c0_20, %c0_21] : memref<32x128xf32, #tpu.memory_space<vmem>>, vector<32x128xf32>
    tpu.vector_store %arg5[%c0_20, %c0_21], %56 {strides = array<i32>} : memref<32x128xf32, #tpu.memory_space<vmem>>, vector<32x128xf32>,
    return
  }
  func.func @transform_0(%arg0: i32) -> i32 {
    %c0_i32 = arith.constant 0 : i32
    %c0_i32_0 = arith.constant 0 : i32
    return %c0_i32 : i32
  }
  func.func @transform_1(%arg0: i32) -> (i32, i32, i32) {
    %c0_i32 = arith.constant 0 : i32
    %c0_i32_0 = arith.constant 0 : i32
    %c0_i32_1 = arith.constant 0 : i32
    return %c0_i32, %arg0, %c0_i32_0 : i32, i32, i32
  }
  func.func @transform_2(%arg0: i32) -> (i32, i32) {
    %c0_i32 = arith.constant 0 : i32
    %c0_i32_0 = arith.constant 0 : i32
    return %arg0, %c0_i32 : i32, i32
  }
  func.func @transform_3(%arg0: i32) -> (i32, i32) {
    %c0_i32 = arith.constant 0 : i32
    %c0_i32_0 = arith.constant 0 : i32
    return %arg0, %c0_i32 : i32, i32
  }
  func.func @transform_4(%arg0: i32) -> (i32, i32) {
    %c0_i32 = arith.constant 0 : i32
    %c0_i32_0 = arith.constant 0 : i32
    return %arg0, %c0_i32 : i32, i32
  }
}

</mosaic_0001>

<bundles_post_ra>
// kernel: tpu_custom_call.1
= control target key start
LH: loop header
LB: loop body
LE: loop exit
PB: predicated region body
PF: predicated region fallthrough
CT: control target
= control target key end

     0   :  { %11 = vsyncpa [#allocation4], 0  ;;  %s469_s0 = inlined_call_operand.<no memory space> [shape: s32[1], index: 0, kind: input, shape index: {}]   ;;  %s470_s1 = inlined_call_operand.hbm [shape: s32[2,32,128], index: 1, kind: input, shape index: {}]   ;;  %s471_s2 = inlined_call_operand.hbm [shape: f32[32,128], index: 2, kind: input, shape index: {}]   ;;  %s472_s3 = inlined_call_operand.hbm [shape: s8[32,128], index: 3, kind: output, shape index: {0}]   ;;  %s473_s4 = inlined_call_operand.hbm [shape: f32[32,128], index: 4, kind: output, shape index: {1}]  }
   0x1   :  { %12 = vsyncpa [#allocation7], 0 }
   0x2   :  { %13 = vsyncpa [#allocation5], 0 }
   0x3   :  { %14 = vsyncpa [#allocation10], 0  ;;  %s344_s15 = smov [#allocation3]   ;;  %s248_s19 = scalar_lea.hbm %s470_s1, 1024 }
   0x4   :  { %s22_s16 = sshll.u32 %s344_s15, 4  ;;  %p249_p0 = scmp.ne.s32.totalorder %s470_s1, %s248_s19  ;;  %s23_s16 = int_to_ptr.vmem [resolvable:$true] %s22_s16 }
   0x5   :  { %p252_p1 = scmp.lt.u32.totalorder %s248_s19, %s470_s1 }
   0x7   :  { %p254_p2 = pnand %p252_p1, %p249_p0 }
   0x9   :  { %257 = shalt.err (!%p254_p2)
}
   0xa   :  { %s258_s24 = scalar_lea.vmem %s23_s16, 1024  ;;  %p263_p4 = scmp.lt.s32.totalorder %s23_s16, %s23_s16 }
   0xb   :  { %p259_p3 = scmp.ne.s32.totalorder %s23_s16, %s258_s24  ;;  %p264_p5 = scmp.lt.s32.totalorder %s258_s24, %s258_s24 }
   0xd   :  { %p265_p6 = por %p264_p5, %p263_p4 }
   0xf   :  { %p266_p7 = pnand %p265_p6, %p259_p3 }
  0x11   :  { %269 = shalt.err (!%p266_p7)
}
  0x12   :  { %s345_s25 = smov 128   ;;  %s346_s26 = smov 8  }
  0x13   :  { %28 = dma.hbm_to_vmem [thread:$0]  %s470_s1, 1024, %s23_s16, [#allocation4], %s345_s25, %s345_s25, %s346_s26  }
  0x14   :  { %s347_s29 = smov [#allocation6]   ;;  %s270_s7 = scalar_lea.hbm %s471_s2, 512 }
  0x15   :  { %s34_s30 = sshll.u32 %s347_s29, 4  ;;  %p271_p8 = scmp.ne.s32.totalorder %s471_s2, %s270_s7  ;;  %s35_s30 = int_to_ptr.vmem [resolvable:$true] %s34_s30 }
  0x16   :  { %p274_p9 = scmp.lt.u32.totalorder %s270_s7, %s471_s2 }
  0x18   :  { %p276_p10 = pnand %p274_p9, %p271_p8 }
  0x1a   :  { %279 = shalt.err (!%p276_p10)
}
  0x1b   :  { %s280_s12 = scalar_lea.vmem %s35_s30, 512  ;;  %p285_p12 = scmp.lt.s32.totalorder %s35_s30, %s35_s30 }
  0x1c   :  { %p281_p11 = scmp.ne.s32.totalorder %s35_s30, %s280_s12  ;;  %p286_p13 = scmp.lt.s32.totalorder %s280_s12, %s280_s12 }
  0x1e   :  { %p287_p0 = por %p286_p13, %p285_p12 }
  0x20   :  { %p288_p1 = pnand %p287_p0, %p281_p11 }
  0x22   :  { %291 = shalt.err (!%p288_p1)
}
  0x23   :  { %40 = dma.hbm_to_vmem [thread:$0]  %s471_s2, 512, %s35_s30, [#allocation7], %s345_s25, %s345_s25, %s346_s26  }
  0x24   :  { %336 = dma.done.wait [#allocation4], 1024  }
  0x25   :  { %337 = vsyncadd [#allocation4], 4294966272 }
  0x26   :  { %338 = dma.done.wait [#allocation7], 512  }
  0x27   :  { %339 = vsyncadd [#allocation7], 4294966784  ;;  %v54_v0 = vstv %s469_s0  ;;  %v50_v1 = vld [vmem:[#allocation3] sm:$0xff]  ;;  %v51_v2 = vld [vmem:[#allocation3 + $0x8] sm:$0xff]  ;;  %s348_s0 = smov [#allocation9]   ;;  %s349_s16 = smov [#allocation8]  }
  0x28   :  { %v52_v3 = vld [vmem:[#allocation3 + $0x10] sm:$0xff]  ;;  %v53_v4 = vld [vmem:[#allocation3 + $0x18] sm:$0xff]  ;;  %v55_v5 = vxor.u32 %v54_v0, %v50_v1  ;;  %v56_v6 = vxor.u32 %v54_v0, %v51_v2  ;;  %v108_v8 = vld [vmem:[#allocation3 + $0x20] sm:$0xff]  ;;  %s200_s2 = sshll.u32 %s348_s0, 4  ;;  %s191_s17 = sshll.u32 %s349_s16, 4  ;;  %s201_s2 = int_to_ptr.vmem [resolvable:$true] %s200_s2  ;;  %s435_s17 = int_to_ptr.vmem [resolvable:$true] %s191_s17 }
  0x29   :  { %v57_v7 = vxor.u32 %v54_v0, %v52_v3  ;;  %v109_v9 = vld [vmem:[#allocation3 + $0x28] sm:$0xff]  ;;  %v58_v10 = vxor.u32 %v54_v0, %v53_v4  ;;  %v110_v11 = vld [vmem:[#allocation3 + $0x30] sm:$0xff]  ;;  %v111_v12 = vld [vmem:[#allocation3 + $0x38] sm:$0xff]  ;;  %v112_v13 = vxor.u32 %v108_v8, %v54_v0  ;;  %s292_s18 = scalar_lea.vmem %s201_s2, 512  ;;  %p297_p3 = scmp.lt.s32.totalorder %s201_s2, %s201_s2 }
  0x2a   :  { %v113_v14 = vxor.u32 %v109_v9, %v54_v0  ;;  %v217_v15 = vshrl.u32 %v55_v5, 16  ;;  %v218_v16 = vshrl.u32 %v56_v6, 16  ;;  %v114_v18 = vxor.u32 %v110_v11, %v54_v0  ;;  %p293_p2 = scmp.ne.s32.totalorder %s201_s2, %s292_s18  ;;  %p298_p4 = scmp.lt.s32.totalorder %s292_s18, %s292_s18 }
  0x2b   :  { %v219_v17 = vshrl.u32 %v57_v7, 16  ;;  %v220_v19 = vshrl.u32 %v58_v10, 16  ;;  %v115_v20 = vxor.u32 %v111_v12, %v54_v0  ;;  %v229_v21 = vshrl.u32 %v112_v13, 16 }
  0x2c   :  { %v230_v22 = vshrl.u32 %v113_v14, 16  ;;  %v67_v23 = vxor.u32 %v217_v15, %v55_v5  ;;  %v68_v24 = vxor.u32 %v218_v16, %v56_v6  ;;  %v231_v26 = vshrl.u32 %v114_v18, 16  ;;  %p299_p5 = por %p298_p4, %p297_p3 }
  0x2d   :  { %v69_v25 = vxor.u32 %v219_v17, %v57_v7  ;;  %v70_v27 = vxor.u32 %v220_v19, %v58_v10  ;;  %v232_v28 = vshrl.u32 %v115_v20, 16  ;;  %v124_v29 = vxor.u32 %v229_v21, %v112_v13  ;;  %v173_v17 = vld [vmem:[#allocation6] sm:$0xff] }
  0x2e   :  { %v125_v30 = vxor.u32 %v230_v22, %v113_v14  ;;  %v71_v31 = vmul.u32 2246822507, %v67_v23  ;;  %v72_v32 = vmul.u32 2246822507, %v68_v24  ;;  %v126_v33 = vxor.u32 %v231_v26, %v114_v18  ;;  %v174_v18 = vld [vmem:[#allocation6 + $0x8] sm:$0xff]  ;;  %v176_v23 = vld [vmem:[#allocation6 + $0x18] sm:$0xff]  ;;  %p300_p6 = pnand %p299_p5, %p293_p2 }
  0x2f   :  { %v73_v34 = vmul.u32 2246822507, %v69_v25  ;;  %v74_v35 = vmul.u32 2246822507, %v70_v27  ;;  %v127_v36 = vxor.u32 %v232_v28, %v115_v20  ;;  %v175_v20 = vld [vmem:[#allocation6 + $0x10] sm:$0xff] }
  0x30   :  { %v221_v37 = vshrl.u32 %v71_v31, 13  ;;  %v222_v38 = vshrl.u32 %v72_v32, 13  ;;  %v128_v39 = vmul.u32 2246822507, %v124_v29  ;;  %v129_v40 = vmul.u32 2246822507, %v125_v30 }
  0x31   :  { %v223_v41 = vshrl.u32 %v73_v34, 13  ;;  %v224_v42 = vshrl.u32 %v74_v35, 13  ;;  %v130_v43 = vmul.u32 2246822507, %v126_v33  ;;  %v131_v44 = vmul.u32 2246822507, %v127_v36 }
  0x32   :  { %v83_v45 = vxor.u32 %v221_v37, %v71_v31  ;;  %v84_v46 = vxor.u32 %v222_v38, %v72_v32  ;;  %v233_v47 = vshrl.u32 %v128_v39, 13  ;;  %v234_v48 = vshrl.u32 %v129_v40, 13 }
  0x33   :  { %v85_v49 = vxor.u32 %v223_v41, %v73_v34  ;;  %v86_v50 = vxor.u32 %v224_v42, %v74_v35  ;;  %v235_v51 = vshrl.u32 %v130_v43, 13  ;;  %v236_v52 = vshrl.u32 %v131_v44, 13 }
  0x34   :  { %v87_v53 = vmul.u32 3266489917, %v83_v45  ;;  %v88_v54 = vmul.u32 3266489917, %v84_v46  ;;  %v140_v55 = vxor.u32 %v233_v47, %v128_v39  ;;  %v141_v56 = vxor.u32 %v234_v48, %v129_v40 }
  0x35   :  { %v89_v57 = vmul.u32 3266489917, %v85_v49  ;;  %v90_v58 = vmul.u32 3266489917, %v86_v50  ;;  %v142_v59 = vxor.u32 %v235_v51, %v130_v43  ;;  %v143_v60 = vxor.u32 %v236_v52, %v131_v44 }
  0x36   :  { %v225_v61 = vshrl.u32 %v87_v53, 16  ;;  %v226_v62 = vshrl.u32 %v88_v54, 16  ;;  %v144_v63 = vmul.u32 3266489917, %v140_v55  ;;  %v145_v0 = vmul.u32 3266489917, %v141_v56 }
  0x37   :  { %v227_v1 = vshrl.u32 %v89_v57, 16  ;;  %v228_v2 = vshrl.u32 %v90_v58, 16  ;;  %v146_v3 = vmul.u32 3266489917, %v142_v59  ;;  %v147_v4 = vmul.u32 3266489917, %v143_v60 }
  0x38   :  { %v99_v5 = vxor.u32 %v225_v61, %v87_v53  ;;  %v100_v6 = vxor.u32 %v226_v62, %v88_v54  ;;  %v237_v7 = vshrl.u32 %v144_v63, 16  ;;  %v238_v8 = vshrl.u32 %v145_v0, 16 }
  0x39   :  { %v101_v9 = vxor.u32 %v227_v1, %v89_v57  ;;  %v102_v10 = vxor.u32 %v228_v2, %v90_v58  ;;  %v239_v11 = vshrl.u32 %v146_v3, 16  ;;  %v240_v12 = vshrl.u32 %v147_v4, 16 }
  0x3a   :  { %vm103_vm0 = vcmp.ge.s32.totalorder %v99_v5, 0  ;;  %v156_v13 = vxor.u32 %v237_v7, %v144_v63  ;;  %v157_v14 = vxor.u32 %v238_v8, %v145_v0  ;;  %vm104_vm1 = vcmp.ge.s32.totalorder %v100_v6, 0 }
  0x3b   :  { %v158_v15 = vxor.u32 %v239_v11, %v146_v3  ;;  %v159_v16 = vxor.u32 %v240_v12, %v147_v4  ;;  %vm105_vm2 = vcmp.ge.s32.totalorder %v101_v9, 0  ;;  %vm106_vm5 = vcmp.ge.s32.totalorder %v102_v10, 0 }
  0x3c   :  { %vm160_vm3 = vcmp.ge.s32.totalorder %v156_v13, 0  ;;  %vm161_vm4 = vcmp.ge.s32.totalorder %v157_v14, 0 }
  0x3d   :  { %vm162_vm6 = vcmp.ge.s32.totalorder %v158_v15, 0  ;;  %vm163_vm7 = vcmp.ge.s32.totalorder %v159_v16, 0  ;;  %vm409_vm8 = vmand %vm103_vm0, %vm160_vm3 }
  0x3e   :  { %vm414_vm9 = vmand %vm104_vm1, %vm161_vm4  ;;  %v177_v22 = vsel %vm409_vm8, %v173_v17, 0.0 }
  0x3f   :  { %vm420_vm10 = vmand %vm105_vm2, %vm162_vm6  ;;  %181 = vst [vmem:[#allocation9] sm:$0xff] %v177_v22  ;;  %v178_v25 = vsel %vm414_vm9, %v174_v18, 0.0 }
  0x40   :  { %vm167_vm11 = vmand %vm106_vm5, %vm163_vm7  ;;  %182 = vst [vmem:[#allocation9 + $0x8] sm:$0xff] %v178_v25  ;;  %v179_v26 = vsel %vm420_vm10, %v175_v20, 0.0 }
  0x41   :  { %vm168_vm12 = vmpackc.low %vm414_vm9, %vm409_vm8  ;;  %183 = vst [vmem:[#allocation9 + $0x10] sm:$0xff] %v179_v26  ;;  %v180_v27 = vsel %vm167_vm11, %v176_v23, 0.0 }
  0x42   :  { %vm169_vm13 = vmpackc.low %vm167_vm11, %vm420_vm10  ;;  %184 = vst [vmem:[#allocation9 + $0x18] sm:$0xff] %v180_v27 }
  0x43   :  { %vm170_vm14 = vmpackc.even %vm169_vm13, %vm168_vm12 }
  0x44   :  { %303 = shalt.err (!%p300_p6)
}
  0x45   :  { %s304_s21 = scalar_lea.hbm %s473_s4, 512 }
  0x46   :  { %p305_p7 = scmp.ne.s32.totalorder %s473_s4, %s304_s21  ;;  %p308_p8 = scmp.lt.u32.totalorder %s304_s21, %s473_s4 }
  0x48   :  { %p310_p9 = pnand %p308_p8, %p305_p7 }
  0x4a   :  { %313 = shalt.err (!%p310_p9)
}
  0x4b   :  { %206 = dma.vmem_to_hbm [thread:$0]  %s201_s2, 512, %s473_s4, [#allocation10], %s345_s25, %s345_s25, %s346_s26   ;;  %v350_v28 = vmov 0  }
  0x4c   :  { %v171_v29 = vsel %vm170_vm14, 16843009, %v350_v28  ;;  %s314_s30 = scalar_lea.vmem %s435_s17, 128  ;;  %p319_p11 = scmp.lt.s32.totalorder %s435_s17, %s435_s17 }
  0x4d   :  { %172 = vst [vmem:[#allocation8] sm:$0xff] %v171_v29  ;;  %p315_p10 = scmp.ne.s32.totalorder %s435_s17, %s314_s30  ;;  %p320_p12 = scmp.lt.s32.totalorder %s314_s30, %s314_s30 }
  0x4f   :  { %p321_p13 = por %p320_p12, %p319_p11 }
  0x51   :  { %p322_p0 = pnand %p321_p13, %p315_p10 }
  0x53   :  { %325 = shalt.err (!%p322_p0)
}
  0x54   :  { %s326_s7 = scalar_lea.hbm %s472_s3, 128 }
  0x55   :  { %p327_p1 = scmp.ne.s32.totalorder %s472_s3, %s326_s7  ;;  %p330_p2 = scmp.lt.u32.totalorder %s326_s7, %s472_s3 }
  0x57   :  { %p332_p3 = pnand %p330_p2, %p327_p1 }
  0x59   :  { %335 = shalt.err (!%p332_p3)
}
  0x5a   :  { %194 = dma.vmem_to_hbm [thread:$0]  %s435_s17, 128, %s472_s3, [#allocation5]  }
  0x5b   :  { %340 = dma.done.wait [#allocation5], 128  }
  0x5c   :  { %341 = vsyncadd [#allocation5], 4294967168 }
  0x5d   :  { %342 = dma.done.wait [#allocation10], 512  }
  0x5e   :  { %343 = vsyncadd [#allocation10], 4294966784 }
  0x5f   :  { %213 = vsyncpa [#allocation4], 1 }
  0x60   :  { %214 = vsyncpa [#allocation7], 1 }
  0x61   :  { %215 = vsyncpa [#allocation5], 1 }
  0x62   :  { %216 = vsyncpa [#allocation10], 1 }

</bundles_post_ra>
